<compile_context>
chip_gen: v7x
topology: tpu7x:2x2x1
jax: 0.10.0
libtpu: 0.0.40
codegen_flags: <defaults>
</compile_context>

<pallas_src>
import math

import jax
import jax.numpy as jnp
from jax.experimental import pallas as pl
from jax.experimental.pallas import tpu as pltpu

_INV_SQRT2 = 1.0 / math.sqrt(2.0)


def _round_up(x, m):
    return ((x + m - 1) // m) * m


def _gelu_exact(h):
    # Exact (erf-based) GELU, matching torch.nn.GELU default.
    return 0.5 * h * (1.0 + jax.lax.erf(h * _INV_SQRT2))


# -----------------------------------------------------------------------------------
# Kernels.  All compute: out = gelu(x @ W1 + b1) @ W2 + b2   (Dropout(p=0.0) = identity)
# TODO(synk): stochastic dropout (p > 0, training mode) not implemented in-kernel.
# -----------------------------------------------------------------------------------

def _ffn_kernel_direct(x_ref, w1_ref, b1_ref, w2_ref, b2_ref, o_ref):
    """Single hidden tile (K == 1): no accumulator needed."""
    h = jnp.dot(x_ref[...], w1_ref[...], preferred_element_type=jnp.float32)
    h = _gelu_exact(h + b1_ref[...])
    out = jnp.dot(h.astype(w2_ref.dtype), w2_ref[...],
                  preferred_element_type=jnp.float32)
    o_ref[...] = (out + b2_ref[...]).astype(o_ref.dtype)


def _ffn_kernel_inplace(x_ref, w1_ref, b1_ref, w2_ref, b2_ref, o_ref):
    """K > 1, float32 output: accumulate directly into the resident output block."""
    k = pl.program_id(1)

    @pl.when(k == 0)
    def _init():
        o_ref[...] = jnp.zeros_like(o_ref)

    h = jnp.dot(x_ref[...], w1_ref[...], preferred_element_type=jnp.float32)
    h = _gelu_exact(h + b1_ref[...])
    o_ref[...] += jnp.dot(h.astype(w2_ref.dtype), w2_ref[...],
                          preferred_element_type=jnp.float32)

    @pl.when(k == pl.num_programs(1) - 1)
    def _finalize():
        o_ref[...] += b2_ref[...]


def _ffn_kernel_acc(x_ref, w1_ref, b1_ref, w2_ref, b2_ref, o_ref, acc_ref):
    """K > 1, non-f32 output: f32 VMEM scratch accumulator, single finalize cast."""
    k = pl.program_id(1)

    @pl.when(k == 0)
    def _init():
        acc_ref[...] = jnp.zeros_like(acc_ref)

    h = jnp.dot(x_ref[...], w1_ref[...], preferred_element_type=jnp.float32)
    h = _gelu_exact(h + b1_ref[...])
    acc_ref[...] += jnp.dot(h.astype(w2_ref.dtype), w2_ref[...],
                            preferred_element_type=jnp.float32)

    @pl.when(k == pl.num_programs(1) - 1)
    def _finalize():
        o_ref[...] = (acc_ref[...] + b2_ref[...]).astype(o_ref.dtype)


# -----------------------------------------------------------------------------------
# Per-generation configuration & tile planning.
# -----------------------------------------------------------------------------------

def _tpu_config():
    """Tiling / VMEM budget derived from the TPU generation."""
    kind = ""
    try:
        kind = jax.devices()[0].device_kind.lower()
    except Exception:
        pass
    vmem_cap = None
    try:
        info = pltpu.get_tpu_info()
        for attr in ("vmem_capacity_bytes", "vmem_bytes"):
            v = getattr(info, attr, None)
            if v:
                vmem_cap = int(v)
                break
    except Exception:
        vmem_cap = None

    if ("v7" in kind) or ("7x" in kind) or (vmem_cap is not None and vmem_cap <= (64 << 20)):
        # v7x: 64 MiB physical VMEM per TC, 2 TensorCores/chip -> keep headroom and
        # prefer >= 2 token tiles so the "parallel" axis feeds both cores.
        return dict(token_block=512, hidden_block=512, vmem_cap=48 << 20,
                    prefer_split=True)
    if "v6" in kind:
        # v6e: 128 MiB VMEM; compute/HBM crossover at ~680 token rows.
        return dict(token_block=1024, hidden_block=1024, vmem_cap=104 << 20,
                    prefer_split=False)
    if "v5" in kind:
        # v5e: crossover ~240 rows; 512 gives margin and VMEM is plentiful.
        return dict(token_block=512, hidden_block=1024, vmem_cap=104 << 20,
                    prefer_split=False)
    # Unknown TPU: conservative middle ground.
    return dict(token_block=512, hidden_block=512, vmem_cap=64 << 20,
                prefer_split=False)


def _choose_tm(tokens, token_block, prefer_split):
    tokens8 = _round_up(max(tokens, 1), 8)
    if tokens8 <= token_block:
        if prefer_split and tokens8 >= 256:
            # Two token tiles so the megacore "parallel" axis has work for both TCs.
            return _round_up((tokens8 + 1) // 2, 8)
        return tokens8
    # Choose the multiple-of-128 tile <= token_block with the least padding waste
    # (ties broken toward the larger tile -> better weight reuse).
    best_tm, best_key = 128, None
    c = 128
    while c <= token_block:
        waste = _round_up(tokens, c) - tokens
        key = (waste, -c)
        if best_key is None or key < best_key:
            best_key, best_tm = key, c
        c += 128
    return best_tm


def _choose_tk(hidden, hidden_block):
    """Returns (tk, padded_hidden). Prefers divisors of hidden -> no weight-pad copy."""
    if hidden <= hidden_block:
        return hidden, hidden
    c = (hidden_block // 128) * 128
    while c >= 128:
        if hidden % c == 0:
            return c, hidden
        c -= 128
    hp = _round_up(hidden, hidden_block)
    return hidden_block, hp


def _vmem_need(tm, tk, dim, w_isz, o_isz, use_scratch):
    """Double-buffered tiles + compiler temporaries (GELU chain) + optional scratch."""
    need = 2 * (tm * dim * w_isz          # x tile
                + dim * tk * w_isz        # W1 tile
                + tk * 4                  # b1 tile (f32)
                + tk * dim * w_isz        # W2 tile
                + dim * 4                 # b2 (f32)
                + tm * dim * o_isz)       # out tile
    need += 3 * tm * tk * 4               # h / GELU / bf16-cast temporaries (f32)
    if use_scratch:
        need += tm * dim * 4              # f32 accumulator scratch
    return need


# -----------------------------------------------------------------------------------
# Public wrapper.
# -----------------------------------------------------------------------------------

def feed_forward(x, w1, b1, w2, b2, *, token_block=None, hidden_block=None,
                 weights_resident=None, compute_dtype=jnp.bfloat16, use_pallas=None):
    """x: (..., dim). Returns same shape/dtype. w1: (dim, hidden), w2: (hidden, dim).

    For best steady-state performance pass w1/w2 already cast to `compute_dtype`
    (avoids a full HBM copy of both weight matrices on every call).
    """
    orig_shape = x.shape
    out_dtype = x.dtype
    dim = orig_shape[-1]
    hidden = w1.shape[1]
    tokens = int(math.prod(orig_shape[:-1])) if len(orig_shape) > 1 else 1

    def _xla_fallback():
        h = _gelu_exact(x.astype(jnp.float32) @ w1.astype(jnp.float32)
                        + b1.astype(jnp.float32))
        return (h @ w2.astype(jnp.float32) + b2.astype(jnp.float32)).astype(out_dtype)

    if use_pallas is None:
        use_pallas = (dim >= 128) and (hidden >= 128)
    if not use_pallas:
        # Narrow models: sub-128 lane widths force masked vst and starve MXU N — XLA wins.
        return _xla_fallback()

    cfg = _tpu_config()
    if token_block is None:
        token_block = cfg["token_block"]
    if hidden_block is None:
        hidden_block = cfg["hidden_block"]
    hidden_block = max(128, (hidden_block // 128) * 128)
    vmem_cap = cfg["vmem_cap"]
    budget = int(vmem_cap * 0.9)

    w_isz = jnp.dtype(compute_dtype).itemsize
    o_isz = jnp.dtype(out_dtype).itemsize

    # --- tile selection ---------------------------------------------------------
    tm = _choose_tm(tokens, token_block, cfg["prefer_split"])

    # Prefer fully-resident W1/W2 (tk = hidden, K == 1): constant weight index_maps
    # mean the weights are DMA'd from HBM exactly once instead of once per token tile.
    resident = _vmem_need(tm, hidden, dim, w_isz, o_isz, False) <= budget
    if weights_resident is not None:
        resident = bool(weights_resident) and \
            _vmem_need(tm, hidden, dim, w_isz, o_isz, False) <= vmem_cap
    if resident:
        tk, hidden_p = hidden, hidden
    else:
        tk, hidden_p = _choose_tk(hidden, hidden_block)

    grid_k = hidden_p // tk
    use_scratch = (grid_k > 1) and (jnp.dtype(out_dtype) != jnp.dtype(jnp.float32))

    # Shrink the token tile if the plan overshoots the per-generation VMEM budget.
    while _vmem_need(tm, tk, dim, w_isz, o_isz, use_scratch) > budget and tm > 128:
        tm = max(128, _round_up(tm // 2, 8))
    need = _vmem_need(tm, tk, dim, w_isz, o_isz, use_scratch)
    if need > vmem_cap:
        # Extreme dims that cannot be tiled under the VMEM budget: let XLA handle it.
        return _xla_fallback()

    padded_tokens = _round_up(tokens, tm)
    grid = (padded_tokens // tm, grid_k)

    # --- operands (skip HBM copies when the caller pre-cast the weights) ----------
    x2d = x.reshape(tokens, dim)
    if x2d.dtype != compute_dtype:
        x2d = x2d.astype(compute_dtype)
    w1c = w1 if w1.dtype == compute_dtype else w1.astype(compute_dtype)
    w2c = w2 if w2.dtype == compute_dtype else w2.astype(compute_dtype)
    b1f = b1.astype(jnp.float32).reshape(1, hidden)
    b2f = b2.astype(jnp.float32).reshape(1, dim)

    if padded_tokens != tokens:
        x2d = jnp.pad(x2d, ((0, padded_tokens - tokens), (0, 0)))
    if hidden_p != hidden:
        # Zero-pad hidden: gelu(0 + 0) = 0 and zero W2 rows contribute exactly 0.
        w1c = jnp.pad(w1c, ((0, 0), (0, hidden_p - hidden)))
        b1f = jnp.pad(b1f, ((0, 0), (0, hidden_p - hidden)))
        w2c = jnp.pad(w2c, ((0, hidden_p - hidden), (0, 0)))

    # --- VMEM limit & cost hint ---------------------------------------------------
    vmem_limit = int(min(max(int(need * 1.25) + (4 << 20), 16 << 20), vmem_cap))

    weight_streams = 1 if grid_k == 1 else grid[0]
    cost = pl.CostEstimate(
        flops=int(4 * padded_tokens * dim * hidden_p),          # 2 matmuls x 2 flops/MAC
        transcendentals=int(padded_tokens * hidden_p),          # erf per hidden element
        bytes_accessed=int(padded_tokens * dim * (w_isz + o_isz)
                           + weight_streams * 2 * dim * hidden_p * w_isz
                           + hidden_p * 4 + dim * 4),
    )

    if grid_k == 1:
        kernel, scratch = _ffn_kernel_direct, []
    elif jnp.dtype(out_dtype) == jnp.dtype(jnp.float32):
        kernel, scratch = _ffn_kernel_inplace, []
    else:
        kernel, scratch = _ffn_kernel_acc, [pltpu.VMEM((tm, dim), jnp.float32)]

    out = pl.pallas_call(
        kernel,
        out_shape=jax.ShapeDtypeStruct((padded_tokens, dim), out_dtype),
        grid_spec=pltpu.PrefetchScalarGridSpec(
            num_scalar_prefetch=0,
            grid=grid,
            in_specs=[
                pl.BlockSpec((tm, dim), lambda i, k: (i, 0)),    # x token tile
                pl.BlockSpec((dim, tk), lambda i, k: (0, k)),    # W1 hidden tile
                pl.BlockSpec((1, tk), lambda i, k: (0, k)),      # b1 hidden tile
                pl.BlockSpec((tk, dim), lambda i, k: (k, 0)),    # W2 hidden tile
                pl.BlockSpec((1, dim), lambda i, k: (0, 0)),     # b2 (full)
            ],
            out_specs=pl.BlockSpec((tm, dim), lambda i, k: (i, 0)),
            scratch_shapes=scratch,
        ),
        compiler_params=pltpu.CompilerParams(
            dimension_semantics=("parallel", "arbitrary"),
            vmem_limit_bytes=vmem_limit,
        ),
        cost_estimate=cost,
    )(x2d, w1c, b1f, w2c, b2f)

    if padded_tokens != tokens:
        out = out[:tokens]
    return out.reshape(orig_shape)


def init_feed_forward_params(key, dim, hidden_dim, dtype=jnp.float32):
    """Deterministic init mirroring the module's __init__ (including its quirk of
    re-initializing ff[0].bias with bound2 and leaving ff[3].bias at default)."""
    bound1 = 1.0 / dim ** 0.5
    bound2 = 1.0 / hidden_dim ** 0.5
    k1, k2, k3, k4 = jax.random.split(key, 4)
    # PyTorch Linear weight is (out, in); we store transposed (in, out).
    w1 = jax.random.uniform(k1, (dim, hidden_dim), dtype, -bound1, bound1)
    b1 = jax.random.uniform(k2, (hidden_dim,), dtype, -bound2, bound2)
    w2 = jax.random.uniform(k3, (hidden_dim, dim), dtype, -bound2, bound2)
    # ff[3].bias keeps PyTorch's default Linear init: U(-1/sqrt(hidden), 1/sqrt(hidden)).
    b2 = jax.random.uniform(k4, (dim,), dtype, -bound2, bound2)
    return w1, b1, w2, b2


def feed_forward_ref(x, w1, b1, w2, b2):
    h = _gelu_exact(x @ w1 + b1)
    return h @ w2 + b2


if __name__ == "__main__":
    key = jax.random.PRNGKey(0)
    # Small but lane-friendly shapes so the Pallas path (dim, hidden >= 128) is exercised.
    batch, seq, dim, hidden = 2, 8, 128, 512

    kx, kp = jax.random.split(key)
    x = jax.random.normal(kx, (batch, seq, dim), jnp.float32)
    w1, b1, w2, b2 = init_feed_forward_params(kp, dim, hidden)
    ref = feed_forward_ref(x, w1, b1, w2, b2)

    # 1) Auto config: weights resident in VMEM, single hidden step (direct kernel).
    out1 = jax.block_until_ready(feed_forward(x, w1, b1, w2, b2))
    assert out1.shape == x.shape and out1.dtype == x.dtype
    assert jnp.allclose(out1, ref, atol=2e-2, rtol=2e-2), "auto config mismatch"

    # 2) Force the k-reduction path with f32 output (in-place accumulation kernel).
    out2 = jax.block_until_ready(
        feed_forward(x, w1, b1, w2, b2, hidden_block=256, weights_resident=False))
    assert jnp.allclose(out2, ref, atol=2e-2, rtol=2e-2), "k-reduction (f32) mismatch"

    # 3) Force the k-reduction path with bf16 output (f32 scratch-accumulator kernel).
    xb = x.astype(jnp.bfloat16)
    out3 = jax.block_until_ready(
        feed_forward(xb, w1, b1, w2, b2, hidden_block=256, weights_resident=False))
    assert out3.dtype == jnp.bfloat16
    assert jnp.allclose(out3.astype(jnp.float32), ref, atol=6e-2, rtol=6e-2), \
        "k-reduction (bf16) mismatch"

    print("KERNEL_OK")
</pallas_src>

<mosaic_0001>
module attributes {stable_mosaic.version = 11 : i64} {
  func.func @_ffn_kernel_direct(%arg0: i32, %arg1: i32, %arg2: memref<16x128xbf16, #tpu.memory_space<vmem>>, %arg3: memref<128x512xbf16, #tpu.memory_space<vmem>>, %arg4: memref<1x512xf32, #tpu.memory_space<vmem>>, %arg5: memref<512x128xbf16, #tpu.memory_space<vmem>>, %arg6: memref<1x128xf32, #tpu.memory_space<vmem>>, %arg7: memref<16x128xf32, #tpu.memory_space<vmem>>) attributes {dimension_semantics = [#tpu.dimension_semantics<parallel>, #tpu.dimension_semantics<arbitrary>], iteration_bounds = array<i64: 1, 1>, scalar_prefetch = 0 : i64, scratch_operands = 0 : i64, tpu.core_type = #tpu.core_type<tc>, window_params = [{transform_indices = @transform_0, window_bounds = array<i64: 16, 128>}, {transform_indices = @transform_1, window_bounds = array<i64: 128, 512>}, {transform_indices = @transform_2, window_bounds = array<i64: 1, 512>}, {transform_indices = @transform_3, window_bounds = array<i64: 512, 128>}, {pipeline_mode = #tpu.pipeline_mode<synchronous>, transform_indices = @transform_4, window_bounds = array<i64: 1, 128>}, {transform_indices = @transform_5, window_bounds = array<i64: 16, 128>}]} {
    %c0 = arith.constant 0 : index
    %c0_0 = arith.constant 0 : index
    %0 = vector.load %arg2[%c0, %c0_0] : memref<16x128xbf16, #tpu.memory_space<vmem>>, vector<16x128xbf16>
    %c0_1 = arith.constant 0 : index
    %c0_2 = arith.constant 0 : index
    %1 = vector.load %arg3[%c0_1, %c0_2] : memref<128x512xbf16, #tpu.memory_space<vmem>>, vector<128x512xbf16>
    %cst = arith.constant dense<0.000000e+00> : vector<16x512xf32>
    %2 = tpu.matmul %0, %1, %cst {dimension_numbers = #tpu.dot_dimension_numbers<[1], [0], [0], [1], [0, 0, 1, 1], [], []>} : vector<16x128xbf16>, vector<128x512xbf16>, vector<16x512xf32> -> vector<16x512xf32>
    %c0_3 = arith.constant 0 : index
    %c0_4 = arith.constant 0 : index
    %3 = vector.load %arg4[%c0_3, %c0_4] : memref<1x512xf32, #tpu.memory_space<vmem>>, vector<1x512xf32>
    %4 = vector.broadcast %3 : vector<1x512xf32> to vector<16x512xf32>
    %5 = arith.addf %2, %4 : vector<16x512xf32>
    %cst_5 = arith.constant 5.000000e-01 : f32
    %6 = vector.broadcast %cst_5 : f32 to vector<16x512xf32>
    %7 = arith.mulf %6, %5 : vector<16x512xf32>
    %cst_6 = arith.constant 0.707106769 : f32
    %8 = vector.broadcast %cst_6 : f32 to vector<16x512xf32>
    %9 = arith.mulf %5, %8 : vector<16x512xf32>
    %10 = math.erf %9 : vector<16x512xf32>
    %cst_7 = arith.constant 1.000000e+00 : f32
    %11 = vector.broadcast %cst_7 : f32 to vector<16x512xf32>
    %12 = arith.addf %11, %10 : vector<16x512xf32>
    %13 = arith.mulf %7, %12 : vector<16x512xf32>
    %14 = arith.truncf %13 : vector<16x512xf32> to vector<16x512xbf16>
    %c0_8 = arith.constant 0 : index
    %c0_9 = arith.constant 0 : index
    %15 = vector.load %arg5[%c0_8, %c0_9] : memref<512x128xbf16, #tpu.memory_space<vmem>>, vector<512x128xbf16>
    %cst_10 = arith.constant dense<0.000000e+00> : vector<16x128xf32>
    %16 = tpu.matmul %14, %15, %cst_10 {dimension_numbers = #tpu.dot_dimension_numbers<[1], [0], [0], [1], [0, 0, 1, 1], [], []>} : vector<16x512xbf16>, vector<512x128xbf16>, vector<16x128xf32> -> vector<16x128xf32>
    %c0_11 = arith.constant 0 : index
    %c0_12 = arith.constant 0 : index
    %17 = vector.load %arg6[%c0_11, %c0_12] : memref<1x128xf32, #tpu.memory_space<vmem>>, vector<1x128xf32>
    %18 = vector.broadcast %17 : vector<1x128xf32> to vector<16x128xf32>
    %19 = arith.addf %16, %18 : vector<16x128xf32>
    %c0_13 = arith.constant 0 : index
    %c0_14 = arith.constant 0 : index
    %20 = vector.load %arg7[%c0_13, %c0_14] : memref<16x128xf32, #tpu.memory_space<vmem>>, vector<16x128xf32>
    tpu.vector_store %arg7[%c0_13, %c0_14], %19 {strides = array<i32>} : memref<16x128xf32, #tpu.memory_space<vmem>>, vector<16x128xf32>,
    return
  }
  func.func @transform_0(%arg0: i32, %arg1: i32) -> (i32, i32) {
    %c0_i32 = arith.constant 0 : i32
    %c0_i32_0 = arith.constant 0 : i32
    return %arg0, %c0_i32 : i32, i32
  }
  func.func @transform_1(%arg0: i32, %arg1: i32) -> (i32, i32) {
    %c0_i32 = arith.constant 0 : i32
    %c0_i32_0 = arith.constant 0 : i32
    return %c0_i32, %arg1 : i32, i32
  }
  func.func @transform_2(%arg0: i32, %arg1: i32) -> (i32, i32) {
    %c0_i32 = arith.constant 0 : i32
    %c0_i32_0 = arith.constant 0 : i32
    return %c0_i32, %arg1 : i32, i32
  }
  func.func @transform_3(%arg0: i32, %arg1: i32) -> (i32, i32) {
    %c0_i32 = arith.constant 0 : i32
    %c0_i32_0 = arith.constant 0 : i32
    return %arg1, %c0_i32 : i32, i32
  }
  func.func @transform_4(%arg0: i32, %arg1: i32) -> (i32, i32) {
    %c0_i32 = arith.constant 0 : i32
    %c0_i32_0 = arith.constant 0 : i32
    %c0_i32_1 = arith.constant 0 : i32
    return %c0_i32, %c0_i32_0 : i32, i32
  }
  func.func @transform_5(%arg0: i32, %arg1: i32) -> (i32, i32) {
    %c0_i32 = arith.constant 0 : i32
    %c0_i32_0 = arith.constant 0 : i32
    return %arg0, %c0_i32 : i32, i32
  }
}

</mosaic_0001>

<bundles_post_ra>
// kernel: tpu_custom_call.1
= control target key start
LH: loop header
LB: loop body
LE: loop exit
PB: predicated region body
PF: predicated region fallthrough
CT: control target
= control target key end

     0   :  { %10 = vsyncpa [#allocation3], 0  ;;  %s1187_s0 = inlined_call_operand.hbm [shape: bf16[16,128], index: 0, kind: input, shape index: {}]   ;;  %s1188_s1 = inlined_call_operand.hbm [shape: bf16[128,512], index: 1, kind: input, shape index: {}]   ;;  %s1189_s2 = inlined_call_operand.vmem [shape: f32[1,512], index: 2, kind: input, shape index: {}]   ;;  %s1190_s3 = inlined_call_operand.hbm [shape: bf16[512,128], index: 3, kind: input, shape index: {}]   ;;  %s1191_s4 = inlined_call_operand.vmem [shape: f32[1,128], index: 4, kind: input, shape index: {}]   ;;  %s1192_s5 = inlined_call_operand.hbm [shape: f32[16,128], index: 5, kind: output, shape index: {}]  }
   0x1   :  { %11 = vsyncpa [#allocation6], 0 }
   0x2   :  { %12 = vsyncpa [#allocation4], 0  ;;  %s1092_s18 = smov [#allocation5]   ;;  %s998_s22 = scalar_lea.hbm %s1188_s1, 4096 }
   0x3   :  { %s30_s19 = sshll.u32 %s1092_s18, 4  ;;  %p999_p0 = scmp.ne.s32.totalorder %s1188_s1, %s998_s22  ;;  %s31_s19 = int_to_ptr.vmem [resolvable:$true] %s30_s19 }
   0x4   :  { %p1002_p1 = scmp.lt.u32.totalorder %s998_s22, %s1188_s1 }
   0x6   :  { %p1004_p2 = pnand %p1002_p1, %p999_p0 }
   0x8   :  { %1007 = shalt.err (!%p1004_p2)
}
   0x9   :  { %s1008_s27 = scalar_lea.vmem %s31_s19, 4096  ;;  %p1013_p4 = scmp.lt.s32.totalorder %s31_s19, %s31_s19 }
   0xa   :  { %p1009_p3 = scmp.ne.s32.totalorder %s31_s19, %s1008_s27  ;;  %p1014_p5 = scmp.lt.s32.totalorder %s1008_s27, %s1008_s27 }
   0xc   :  { %p1015_p6 = por %p1014_p5, %p1013_p4 }
   0xe   :  { %p1016_p7 = pnand %p1015_p6, %p1009_p3 }
  0x10   :  { %1019 = shalt.err (!%p1016_p7)
}
  0x11   :  { %s1093_s28 = smov 256   ;;  %s1094_s29 = smov 16  }
  0x12   :  { %36 = dma.hbm_to_vmem [thread:$0]  %s1188_s1, 4096, %s31_s19, [#allocation6], %s1093_s28, %s1093_s28, %s1094_s29  }
  0x13   :  { %s1095_s7 = smov [#allocation2]   ;;  %s1020_s11 = scalar_lea.hbm %s1187_s0, 128 }
  0x14   :  { %s18_s8 = sshll.u32 %s1095_s7, 4  ;;  %p1021_p8 = scmp.ne.s32.totalorder %s1187_s0, %s1020_s11  ;;  %s19_s8 = int_to_ptr.vmem [resolvable:$true] %s18_s8 }
  0x15   :  { %p1024_p9 = scmp.lt.u32.totalorder %s1020_s11, %s1187_s0 }
  0x17   :  { %p1026_p10 = pnand %p1024_p9, %p1021_p8 }
  0x19   :  { %1029 = shalt.err (!%p1026_p10)
}
  0x1a   :  { %s1030_s16 = scalar_lea.vmem %s19_s8, 128  ;;  %p1035_p12 = scmp.lt.s32.totalorder %s19_s8, %s19_s8 }
  0x1b   :  { %p1031_p11 = scmp.ne.s32.totalorder %s19_s8, %s1030_s16  ;;  %p1036_p13 = scmp.lt.s32.totalorder %s1030_s16, %s1030_s16 }
  0x1d   :  { %p1037_p0 = por %p1036_p13, %p1035_p12 }
  0x1f   :  { %p1038_p1 = pnand %p1037_p0, %p1031_p11 }
  0x21   :  { %1041 = shalt.err (!%p1038_p1)
}
  0x22   :  { %s1096_s1 = smov 64   ;;  %s1097_s17 = smov 4  }
  0x23   :  { %24 = dma.hbm_to_vmem [thread:$0]  %s1187_s0, 128, %s19_s8, [#allocation3], %s1096_s1, %s1096_s1, %s1097_s17  }
  0x24   :  { %s1098_s20 = smov [#allocation7]   ;;  %s1042_s24 = scalar_lea.hbm %s1190_s3, 4096 }
  0x25   :  { %s44_s21 = sshll.u32 %s1098_s20, 4  ;;  %p1043_p2 = scmp.ne.s32.totalorder %s1190_s3, %s1042_s24  ;;  %s45_s21 = int_to_ptr.vmem [resolvable:$true] %s44_s21 }
  0x26   :  { %p1046_p3 = scmp.lt.u32.totalorder %s1042_s24, %s1190_s3 }
  0x28   :  { %p1048_p4 = pnand %p1046_p3, %p1043_p2 }
  0x2a   :  { %1051 = shalt.err (!%p1048_p4)
}
  0x2b   :  { %s1052_s29 = scalar_lea.vmem %s45_s21, 4096  ;;  %p1057_p6 = scmp.lt.s32.totalorder %s45_s21, %s45_s21 }
  0x2c   :  { %p1053_p5 = scmp.ne.s32.totalorder %s45_s21, %s1052_s29  ;;  %p1058_p7 = scmp.lt.s32.totalorder %s1052_s29, %s1052_s29 }
  0x2e   :  { %p1059_p8 = por %p1058_p7, %p1057_p6 }
  0x30   :  { %p1060_p9 = pnand %p1059_p8, %p1053_p5 }
  0x32   :  { %1063 = shalt.err (!%p1060_p9)
}
  0x33   :  { %50 = dma.hbm_to_vmem [thread:$0]  %s1190_s3, 4096, %s45_s21, [#allocation6], %s1096_s1, %s1096_s1, %s1097_s17  }
  0x34   :  { %1086 = dma.done.wait [#allocation3], 128  }
  0x35   :  { %1087 = vsyncadd [#allocation3], 4294967168 }
  0x36   :  { %1088 = dma.done.wait [#allocation6], 8192  }
  0x37   :  { %1089 = vsyncadd [#allocation6], 4294959104  ;;  %v1099_v0 = vmov 0   ;;  %v901_v1 = vld [vmem:[#allocation5 + $0x4] ss:$16 sps:$4 sm:$0xff]   ;;  %v949_v34 = vld [vmem:[#allocation2] sm:$0xff]  }
  0x38   :  { %317 = vmatprep.mubr.bf16.mxu0 %v1099_v0  ;;  %360 = vmatprep.mubr.bf16.mxu1 %v1099_v0  ;;  %v903_v2 = vld [vmem:[#allocation5 + $0xc] ss:$16 sps:$4 sm:$0xff]   ;;  %v905_v3 = vld [vmem:[#allocation5] ss:$16 sps:$4 sm:$0xff]   ;;  %v906_v4 = vld [vmem:[#allocation5 + $0x8] ss:$16 sps:$4 sm:$0xff]  }
  0x39   :  { %285 = vmatprep.subr.bf16.mxu0 %v901_v1  ;;  %328 = vmatprep.subr.bf16.mxu1 %v903_v2  ;;  %v907_v5 = vld [vmem:[#allocation5 + $0x24] ss:$16 sps:$4 sm:$0xff]   ;;  %v909_v6 = vld [vmem:[#allocation5 + $0x2c] ss:$16 sps:$4 sm:$0xff]   ;;  %v911_v7 = vld [vmem:[#allocation5 + $0x20] ss:$16 sps:$4 sm:$0xff]   ;;  %v99_v2 = vlaneseq }
  0x3a   :  { %286 = vmatpush1.bf16.msra.mxu0 %v905_v3  ;;  %329 = vmatpush1.bf16.msra.mxu1 %v906_v4  ;;  %v912_v8 = vld [vmem:[#allocation5 + $0x28] ss:$16 sps:$4 sm:$0xff]   ;;  %v913_v9 = vld [vmem:[#allocation5 + $0x44] ss:$16 sps:$4 sm:$0xff]   ;;  %v915_v10 = vld [vmem:[#allocation5 + $0x4c] ss:$16 sps:$4 sm:$0xff]  }
  0x3b   :  { %287 = vmatprep.subr.bf16.mxu0 %v907_v5  ;;  %330 = vmatprep.subr.bf16.mxu1 %v909_v6  ;;  %v917_v11 = vld [vmem:[#allocation5 + $0x40] ss:$16 sps:$4 sm:$0xff]   ;;  %v918_v12 = vld [vmem:[#allocation5 + $0x48] ss:$16 sps:$4 sm:$0xff]   ;;  %v919_v13 = vld [vmem:[#allocation5 + $0x64] ss:$16 sps:$4 sm:$0xff]  }
  0x3c   :  { %v921_v14 = vld [vmem:[#allocation5 + $0x6c] ss:$16 sps:$4 sm:$0xff]   ;;  %v923_v15 = vld [vmem:[#allocation5 + $0x60] ss:$16 sps:$4 sm:$0xff]   ;;  %v924_v16 = vld [vmem:[#allocation5 + $0x68] ss:$16 sps:$4 sm:$0xff]  }
  0x3d   :  { %v925_v17 = vld [vmem:[#allocation5 + $0x84] ss:$16 sps:$4 sm:$0xff]   ;;  %v927_v18 = vld [vmem:[#allocation5 + $0x8c] ss:$16 sps:$4 sm:$0xff]   ;;  %v929_v19 = vld [vmem:[#allocation5 + $0x80] ss:$16 sps:$4 sm:$0xff]  }
  0x3e   :  { %288 = vmatpush1.bf16.msra.mxu0 %v911_v7  ;;  %331 = vmatpush1.bf16.msra.mxu1 %v912_v8  ;;  %v930_v20 = vld [vmem:[#allocation5 + $0x88] ss:$16 sps:$4 sm:$0xff]   ;;  %v931_v21 = vld [vmem:[#allocation5 + $0xa4] ss:$16 sps:$4 sm:$0xff]   ;;  %v933_v22 = vld [vmem:[#allocation5 + $0xac] ss:$16 sps:$4 sm:$0xff]  }
  0x3f   :  { %289 = vmatprep.subr.bf16.mxu0 %v913_v9  ;;  %332 = vmatprep.subr.bf16.mxu1 %v915_v10  ;;  %v935_v23 = vld [vmem:[#allocation5 + $0xa0] ss:$16 sps:$4 sm:$0xff]   ;;  %v936_v24 = vld [vmem:[#allocation5 + $0xa8] ss:$16 sps:$4 sm:$0xff]   ;;  %v937_v25 = vld [vmem:[#allocation5 + $0xc4] ss:$16 sps:$4 sm:$0xff]  }
  0x40   :  { %v939_v26 = vld [vmem:[#allocation5 + $0xcc] ss:$16 sps:$4 sm:$0xff]   ;;  %v941_v27 = vld [vmem:[#allocation5 + $0xc0] ss:$16 sps:$4 sm:$0xff]   ;;  %v942_v28 = vld [vmem:[#allocation5 + $0xc8] ss:$16 sps:$4 sm:$0xff]  }
  0x41   :  { %v943_v29 = vld [vmem:[#allocation5 + $0xe4] ss:$16 sps:$4 sm:$0xff]   ;;  %v945_v30 = vld [vmem:[#allocation5 + $0xec] ss:$16 sps:$4 sm:$0xff]   ;;  %v947_v31 = vld [vmem:[#allocation5 + $0xe0] ss:$16 sps:$4 sm:$0xff]  }
  0x42   :  { %290 = vmatpush1.bf16.msra.mxu0 %v917_v11  ;;  %333 = vmatpush1.bf16.msra.mxu1 %v918_v12  ;;  %v948_v32 = vld [vmem:[#allocation5 + $0xe8] ss:$16 sps:$4 sm:$0xff]   ;;  %v950_v33 = vld [vmem:[#allocation7 + $0x40] sm:$0xff]   ;;  %v958_v42 = vld [vmem:[#allocation7 + $0x50] sm:$0xff]   ;;  %v100_v3 = vshrl.u32 %v99_v2, 7  ;;  %s1100_s8 = smov [#allocation8]  }
  0x43   :  { %291 = vmatprep.subr.bf16.mxu0 %v919_v13  ;;  %334 = vmatprep.subr.bf16.mxu1 %v921_v14  ;;  %v951_v35 = vld [vmem:[#allocation7 + $0xc0] sm:$0xff]   ;;  %v954_v38 = vld [vmem:[#allocation7 + $0x48] sm:$0xff]   ;;  %v959_v43 = vld [vmem:[#allocation7 + $0xd0] sm:$0xff]   ;;  %s767_s9 = sshll.u32 %s1100_s8, 4  ;;  %s768_s9 = int_to_ptr.vmem [resolvable:$true] %s767_s9 }
  0x44   :  { %v952_v36 = vld [vmem:[#allocation7] sm:$0xff]   ;;  %v955_v39 = vld [vmem:[#allocation7 + $0xc8] sm:$0xff]   ;;  %v960_v44 = vld [vmem:[#allocation7 + $0x10] sm:$0xff]   ;;  %v101_v4 = vsub.s32 0, %v100_v3  ;;  %v109_v5 = vsub.s32 2, %v100_v3  ;;  %v105_v7 = vsub.s32 1, %v100_v3  ;;  %p1069_p11 = scmp.lt.s32.totalorder %s768_s9, %s768_s9 }
  0x45   :  { %v953_v37 = vld [vmem:[#allocation7 + $0x80] sm:$0xff]   ;;  %v956_v40 = vld [vmem:[#allocation7 + $0x8] sm:$0xff]   ;;  %v961_v45 = vld [vmem:[#allocation7 + $0x90] sm:$0xff]   ;;  %v113_v8 = vsub.s32 3, %v100_v3 }
  0x46   :  { %292 = vmatpush1.bf16.msra.mxu0 %v923_v15  ;;  %335 = vmatpush1.bf16.msra.mxu1 %v924_v16  ;;  %v957_v41 = vld [vmem:[#allocation7 + $0x88] sm:$0xff]   ;;  %v962_v46 = vld [vmem:[#allocation7 + $0x58] sm:$0xff]   ;;  %v966_v50 = vld [vmem:[#allocation7 + $0x60] sm:$0xff]  }
  0x47   :  { %293 = vmatprep.subr.bf16.mxu0 %v925_v17  ;;  %336 = vmatprep.subr.bf16.mxu1 %v927_v18  ;;  %v963_v47 = vld [vmem:[#allocation7 + $0xd8] sm:$0xff]   ;;  %v967_v51 = vld [vmem:[#allocation7 + $0xe0] sm:$0xff]   ;;  %v970_v54 = vld [vmem:[#allocation7 + $0x68] sm:$0xff]  }
  0x48   :  { %v964_v48 = vld [vmem:[#allocation7 + $0x18] sm:$0xff]   ;;  %v968_v52 = vld [vmem:[#allocation7 + $0x20] sm:$0xff]   ;;  %v971_v55 = vld [vmem:[#allocation7 + $0xe8] sm:$0xff]  }
  0x49   :  { %v965_v49 = vld [vmem:[#allocation7 + $0x98] sm:$0xff]   ;;  %v969_v53 = vld [vmem:[#allocation7 + $0xa0] sm:$0xff]   ;;  %v972_v56 = vld [vmem:[#allocation7 + $0x28] sm:$0xff]  }
  0x4a   :  { %294 = vmatpush1.bf16.msra.mxu0 %v929_v19  ;;  %337 = vmatpush1.bf16.msra.mxu1 %v930_v20  ;;  %v973_v57 = vld [vmem:[#allocation7 + $0xa8] sm:$0xff]   ;;  %v974_v58 = vld [vmem:[#allocation7 + $0x70] sm:$0xff]   ;;  %v978_v62 = vld [vmem:[#allocation7 + $0x78] sm:$0xff]  }
  0x4b   :  { %295 = vmatprep.subr.bf16.mxu0 %v931_v21  ;;  %338 = vmatprep.subr.bf16.mxu1 %v933_v22  ;;  %v975_v59 = vld [vmem:[#allocation7 + $0xf0] sm:$0xff]   ;;  %v979_v63 = vld [vmem:[#allocation7 + $0xf8] sm:$0xff]  }
  0x4c   :  { %v976_v60 = vld [vmem:[#allocation7 + $0x30] sm:$0xff]   ;;  %v980_v0 = vld [vmem:[#allocation7 + $0x38] sm:$0xff]  }
  0x4d   :  { %v977_v61 = vld [vmem:[#allocation7 + $0xb0] sm:$0xff]   ;;  %v981_v1 = vld [vmem:[#allocation7 + $0xb8] sm:$0xff]  }
  0x4e   :  { %296 = vmatpush1.bf16.msra.mxu0 %v935_v23  ;;  %339 = vmatpush1.bf16.msra.mxu1 %v936_v24  ;;  %v97_v6 = vld [vmem:[%s1189_s2] sm:$0xf] }
  0x4f   :  { %297 = vmatprep.subr.bf16.mxu0 %v937_v25  ;;  %340 = vmatprep.subr.bf16.mxu1 %v939_v26  ;;  %v102_v9 = vrot.slane %v97_v6, %v101_v4  ;;  %v110_v10 = vrot.slane %v97_v6, %v109_v5  ;;  %v106_v11 = vrot.slane %v97_v6, %v105_v7 }
  0x50   :  { %v114_v12 = vrot.slane %v97_v6, %v113_v8 }
  0x52   :  { %298 = vmatpush1.bf16.msra.mxu0 %v941_v27  ;;  %341 = vmatpush1.bf16.msra.mxu1 %v942_v28 }
  0x53   :  { %299 = vmatprep.subr.bf16.mxu0 %v943_v29  ;;  %342 = vmatprep.subr.bf16.mxu1 %v945_v30 }
  0x56   :  { %300 = vmatpush1.bf16.msra.mxu0 %v947_v31  ;;  %343 = vmatpush1.bf16.msra.mxu1 %v948_v32 }
  0x57   :  { %846 = vmatprep.subr.bf16.mxu0 %v950_v33  ;;  %868 = vmatprep.subr.bf16.mxu1 %v951_v35 }
  0x59   :  { %318 = vmatmul.mubr.bf16.vlgmr.msra.gmra.mrb[0].mxu0 %v949_v34  ;;  %361 = vmatmul.mubr.bf16.vlgmr.msra.gmra.mrb[0].mxu1 %v949_v34 }
  0x5a   :  { %847 = vmatpush3.bf16.msra.mxu0 %v952_v36  ;;  %869 = vmatpush3.bf16.msra.mxu1 %v953_v37 }
  0x5b   :  { %848 = vmatprep.subr.bf16.mxu0 %v954_v38  ;;  %870 = vmatprep.subr.bf16.mxu1 %v955_v39 }
  0x5e   :  { %849 = vmatpush3.bf16.msra.mxu0 %v956_v40  ;;  %871 = vmatpush3.bf16.msra.mxu1 %v957_v41 }
  0x5f   :  { %850 = vmatprep.subr.bf16.mxu0 %v958_v42  ;;  %872 = vmatprep.subr.bf16.mxu1 %v959_v43 }
  0x62   :  { %851 = vmatpush3.bf16.msra.mxu0 %v960_v44  ;;  %873 = vmatpush3.bf16.msra.mxu1 %v961_v45 }
  0x63   :  { %852 = vmatprep.subr.bf16.mxu0 %v962_v46  ;;  %874 = vmatprep.subr.bf16.mxu1 %v963_v47 }
  0x66   :  { %853 = vmatpush3.bf16.msra.mxu0 %v964_v48  ;;  %875 = vmatpush3.bf16.msra.mxu1 %v965_v49 }
  0x67   :  { %854 = vmatprep.subr.bf16.mxu0 %v966_v50  ;;  %876 = vmatprep.subr.bf16.mxu1 %v967_v51 }
  0x6a   :  { %855 = vmatpush3.bf16.msra.mxu0 %v968_v52  ;;  %877 = vmatpush3.bf16.msra.mxu1 %v969_v53 }
  0x6b   :  { %856 = vmatprep.subr.bf16.mxu0 %v970_v54  ;;  %878 = vmatprep.subr.bf16.mxu1 %v971_v55 }
  0x6e   :  { %857 = vmatpush3.bf16.msra.mxu0 %v972_v56  ;;  %879 = vmatpush3.bf16.msra.mxu1 %v973_v57 }
  0x6f   :  { %858 = vmatprep.subr.bf16.mxu0 %v974_v58  ;;  %880 = vmatprep.subr.bf16.mxu1 %v975_v59 }
  0x72   :  { %859 = vmatpush3.bf16.msra.mxu0 %v976_v60  ;;  %881 = vmatpush3.bf16.msra.mxu1 %v977_v61 }
  0x73   :  { %860 = vmatprep.subr.bf16.mxu0 %v978_v62  ;;  %882 = vmatprep.subr.bf16.mxu1 %v979_v63 }
  0x76   :  { %861 = vmatpush3.bf16.msra.mxu0 %v980_v0  ;;  %883 = vmatpush3.bf16.msra.mxu1 %v981_v1 }
 0x12c   :  { %v319_v13 = vpop.f32.mrb[0].mxu0  ;;  %v362_v14 = vpop.f32.mrb[0].mxu1 }
 0x12d   :  { %v320_v15 = vadd.f32 %v319_v13, %v102_v9  ;;  %v363_v16 = vadd.f32 %v362_v14, %v110_v10  ;;  %v321_v17 = vpop.f32.mrb[1].mxu0  ;;  %v364_v18 = vpop.f32.mrb[1].mxu1 }
 0x12e   :  { %v322_v19 = vadd.f32 %v321_v17, %v106_v11  ;;  %v365_v20 = vadd.f32 %v364_v18, %v114_v12  ;;  %v323_v21 = vpop.f32.mrb[2].mxu0  ;;  %v366_v22 = vpop.f32.mrb[2].mxu1 }
 0x12f   :  { %v379_v23 = vmul.f32 0.70710677, %v320_v15  ;;  %v381_v24 = vmul.f32 0.70710677, %v363_v16  ;;  %v324_v27 = vadd.f32 %v323_v21, %v102_v9  ;;  %v367_v28 = vadd.f32 %v366_v22, %v110_v10  ;;  %v325_v29 = vpop.f32.mrb[3].mxu0  ;;  %v368_v30 = vpop.f32.mrb[3].mxu1 }
 0x130   :  { %v380_v25 = vmul.f32 0.70710677, %v322_v19  ;;  %v382_v26 = vmul.f32 0.70710677, %v365_v20  ;;  %v326_v31 = vadd.f32 %v325_v29, %v106_v11  ;;  %v369_v32 = vadd.f32 %v368_v30, %v114_v12  ;;  %v813_v11 = vld [vmem:[%s1191_s4] ss:$0 sm:$0xff] }
 0x131   :  { %982 = verf.f32 %v379_v23  ;;  %v383_v33 = vmul.f32 0.70710677, %v324_v27  ;;  %v385_v34 = vmul.f32 0.70710677, %v367_v28  ;;  %v371_v43 = vmul.f32 0.5, %v320_v15  ;;  %s1064_s4 = scalar_lea.vmem %s768_s9, 256 }
 0x132   :  { %984 = verf.f32 %v381_v24  ;;  %v384_v35 = vmul.f32 0.70710677, %v326_v31  ;;  %v386_v36 = vmul.f32 0.70710677, %v369_v32  ;;  %v373_v44 = vmul.f32 0.5, %v363_v16  ;;  %p1065_p10 = scmp.ne.s32.totalorder %s768_s9, %s1064_s4  ;;  %p1070_p12 = scmp.lt.s32.totalorder %s1064_s4, %s1064_s4 }
 0x133   :  { %986 = verf.f32 %v380_v25  ;;  %v372_v47 = vmul.f32 0.5, %v322_v19  ;;  %v375_v49 = vmul.f32 0.5, %v324_v27  ;;  %v374_v52 = vmul.f32 0.5, %v365_v20 }
 0x134   :  { %988 = verf.f32 %v382_v26  ;;  %v377_v54 = vmul.f32 0.5, %v367_v28  ;;  %v376_v59 = vmul.f32 0.5, %v326_v31  ;;  %v378_v63 = vmul.f32 0.5, %v369_v32  ;;  %p1071_p13 = por %p1070_p12, %p1069_p11 }
 0x135   :  { %990 = verf.f32 %v383_v33 }
 0x136   :  { %992 = verf.f32 %v385_v34  ;;  %p1072_p0 = pnand %p1071_p13, %p1065_p10 }
 0x137   :  { %994 = verf.f32 %v384_v35 }
 0x138   :  { %996 = verf.f32 %v386_v36 }
 0x13b   :  { %v983_v37 = vpop.eup %982 }
 0x13c   :  { %v985_v38 = vpop.eup %984  ;;  %v395_v41 = vadd.f32 1.0, %v983_v37 }
 0x13d   :  { %v987_v39 = vpop.eup %986  ;;  %v397_v45 = vadd.f32 1.0, %v985_v38 }
 0x13e   :  { %v989_v40 = vpop.eup %988  ;;  %v396_v48 = vadd.f32 1.0, %v987_v39  ;;  %v403_v57 = vmul.f32 %v395_v41, %v371_v43 }
 0x13f   :  { %v991_v42 = vpop.eup %990  ;;  %v398_v53 = vadd.f32 1.0, %v989_v40  ;;  %v405_v61 = vmul.f32 %v397_v45, %v373_v44 }
 0x140   :  { %v993_v46 = vpop.eup %992  ;;  %v399_v50 = vadd.f32 1.0, %v991_v42  ;;  %v404_v1 = vmul.f32 %v396_v48, %v372_v47 }
 0x141   :  { %v995_v51 = vpop.eup %994  ;;  %v401_v55 = vadd.f32 1.0, %v993_v46  ;;  %v406_v4 = vmul.f32 %v398_v53, %v374_v52 }
 0x142   :  { %v997_v56 = vpop.eup %996  ;;  %v407_v58 = vmul.f32 %v399_v50, %v375_v49  ;;  %v400_v60 = vadd.f32 1.0, %v995_v51 }
 0x143   :  { %v409_v62 = vmul.f32 %v401_v55, %v377_v54  ;;  %v402_v0 = vadd.f32 1.0, %v997_v56 }
 0x144   :  { %v411_v2 = vpack.c.bf16 %v407_v58, %v403_v57  ;;  %v408_v3 = vmul.f32 %v400_v60, %v376_v59 }
 0x145   :  { %v413_v5 = vpack.c.bf16 %v409_v62, %v405_v61  ;;  %v410_v6 = vmul.f32 %v402_v0, %v378_v63 }
 0x146   :  { %v412_v7 = vpack.c.bf16 %v408_v3, %v404_v1 }
 0x147   :  { %v414_v8 = vpack.c.bf16 %v410_v6, %v406_v4 }
 0x148   :  { %710 = vmatprep.mubr.bf16.mxu0 %v412_v7 }
 0x149   :  { %751 = vmatprep.mubr.bf16.mxu1 %v414_v8  ;;  %711 = vmatmul.mubr.bf16.vlgmr.msra.gmra.mrb[4].mxu0 %v411_v2 }
 0x14a   :  { %752 = vmatmul.mubr.bf16.vlgmr.msra.gmra.mrb[4].mxu1 %v413_v5 }
 0x21c   :  { %v862_v9 = vpop.f32.mrb[4].mxu0 }
 0x21d   :  { %v884_v10 = vpop.f32.mrb[4].mxu1  ;;  %v863_v12 = vpop.f32.mrb[5].mxu0 }
 0x21e   :  { %v864_v13 = vadd.f32 %v863_v12, %v862_v9  ;;  %v885_v14 = vpop.f32.mrb[5].mxu1  ;;  %v865_v15 = vpop.f32.mrb[6].mxu0 }
 0x21f   :  { %v886_v16 = vadd.f32 %v885_v14, %v884_v10  ;;  %v887_v17 = vpop.f32.mrb[6].mxu1  ;;  %v866_v18 = vpop.f32.mrb[7].mxu0 }
 0x220   :  { %v713_v19 = vadd.f32 %v864_v13, %v813_v11  ;;  %v867_v20 = vadd.f32 %v866_v18, %v865_v15  ;;  %v888_v21 = vpop.f32.mrb[7].mxu1 }
 0x221   :  { %v889_v22 = vadd.f32 %v888_v21, %v887_v17 }
 0x222   :  { %v754_v23 = vadd.f32 %v886_v16, %v713_v19  ;;  %v716_v24 = vadd.f32 %v867_v20, %v813_v11 }
 0x224   :  { %760 = vst [vmem:[#allocation8] sm:$0xff] %v754_v23  ;;  %v757_v25 = vadd.f32 %v889_v22, %v716_v24 }
 0x226   :  { %761 = vst [vmem:[#allocation8 + $0x8] sm:$0xff] %v757_v25 }
 0x227   :  { %1075 = shalt.err (!%p1072_p0)
}
 0x228   :  { %s1076_s12 = scalar_lea.hbm %s1192_s5, 256 }
 0x229   :  { %p1077_p1 = scmp.ne.s32.totalorder %s1192_s5, %s1076_s12  ;;  %p1080_p2 = scmp.lt.u32.totalorder %s1076_s12, %s1192_s5 }
 0x22b   :  { %p1082_p3 = pnand %p1080_p2, %p1077_p1 }
 0x22d   :  { %1085 = shalt.err (!%p1082_p3)
}
 0x22e   :  { %s1101_s1 = smov 128   ;;  %s1102_s17 = smov 8  }
 0x22f   :  { %773 = dma.vmem_to_hbm [thread:$0]  %s768_s9, 256, %s1192_s5, [#allocation4], %s1101_s1, %s1101_s1, %s1102_s17  }
 0x230   :  { %1090 = dma.done.wait [#allocation4], 256  }
 0x231   :  { %1091 = vsyncadd [#allocation4], 4294967040 }
 0x232   :  { %777 = vsyncpa [#allocation3], 1 }
 0x233   :  { %778 = vsyncpa [#allocation6], 1 }
 0x234   :  { %779 = vsyncpa [#allocation4], 1 }

</bundles_post_ra>
